<compile_context>
chip_gen: v6e
topology: v6e:2x2x1
jax: 0.10.0
libtpu: 0.0.40
codegen_flags: <defaults>
</compile_context>

<pallas_src>
import jax
import jax.numpy as jnp
from jax.experimental import pallas as pl
from jax.experimental.pallas import tpu as pltpu

H1, H2, OUT = 32, 16, 2
MAX_BLOCK_BATCH = 4096  # sweep 2048-8192; 4096 keeps double-buffered tiles < v5e's 16 MiB default


def _mlp_kernel(x_ref, w1_ref, b1_ref, w2_ref, b2_ref, w3_ref, b3_ref, o_ref):
    # One batch tile per grid step; all weights/biases are VMEM-resident blocks.
    x = x_ref[...]

    h1 = jnp.dot(x, w1_ref[...], preferred_element_type=jnp.float32) + b1_ref[...]
    h1 = jnp.maximum(h1, 0.0)                      # ReLU (bn1 = Identity)
    # dropout = Identity (use_dropout=False)

    h2 = jnp.dot(h1, w2_ref[...], preferred_element_type=jnp.float32) + b2_ref[...]
    h2 = jnp.maximum(h2, 0.0)                      # ReLU (bn2 = Identity)
    # dropout = Identity (use_dropout=False)

    out = jnp.dot(h2, w3_ref[...], preferred_element_type=jnp.float32) + b3_ref[...]
    o_ref[...] = out.astype(o_ref.dtype)


def _round_up(n, m):
    return ((n + m - 1) // m) * m


def _pick_tile(B, block_batch):
    """Batch tile: multiple of 8 (sublane), >= 2 grid steps when possible (v7x dual-TC),
    capped at block_batch.  For tiny batches a single full-extent block is used."""
    if B <= 8:
        return B  # block == full array dim along batch -> always legal, grid = 1
    tb = max(8, _round_up(pl.cdiv(B, 2), 8))
    return min(tb, block_batch)


def simple_nn_forward(x, w1, b1, w2, b2, w3, b3, *, block_batch=MAX_BLOCK_BATCH):
    """x: [B, input_size] f32.  Biases passed as [1, out] rows for 2-D broadcast."""
    B, in_dim = x.shape
    tb = _pick_tile(B, block_batch)
    grid = (pl.cdiv(B, tb),)          # last block may be partial; Pallas masks it

    resident = lambda i: (0, 0)       # weights/biases: same block every step -> stay in VMEM

    return pl.pallas_call(
        _mlp_kernel,
        out_shape=jax.ShapeDtypeStruct((B, OUT), x.dtype),
        grid=grid,
        in_specs=[
            pl.BlockSpec((tb, in_dim), lambda i: (i, 0)),   # x: tiled over batch
            pl.BlockSpec((in_dim, H1), resident),            # W1
            pl.BlockSpec((1, H1), resident),                 # b1
            pl.BlockSpec((H1, H2), resident),                # W2
            pl.BlockSpec((1, H2), resident),                 # b2
            pl.BlockSpec((H2, OUT), resident),               # W3
            pl.BlockSpec((1, OUT), resident),                # b3
        ],
        out_specs=pl.BlockSpec((tb, OUT), lambda i: (i, 0)),
        compiler_params=pltpu.CompilerParams(
            dimension_semantics=("parallel",),  # shard batch tiles across TCs (v7x)
            vmem_limit_bytes=32 * 1024 * 1024,  # headroom if block_batch is raised (v5e 16 MiB default)
        ),
    )(x, w1, b1, w2, b2, w3, b3)


def init_params(key, input_size):
    """Deterministic init mirroring nn.Linear shapes (stored pre-transposed)."""
    k1, k2, k3, k4, k5, k6 = jax.random.split(key, 6)

    def uniform(k, shape, fan_in):
        bound = 1.0 / jnp.sqrt(jnp.float32(fan_in))
        return jax.random.uniform(k, shape, jnp.float32, -bound, bound)

    w1 = uniform(k1, (input_size, H1), input_size)
    b1 = uniform(k2, (1, H1), input_size)
    w2 = uniform(k3, (H1, H2), H1)
    b2 = uniform(k4, (1, H2), H1)
    w3 = uniform(k5, (H2, OUT), H2)
    b3 = uniform(k6, (1, OUT), H2)
    return w1, b1, w2, b2, w3, b3


def _reference(x, params):
    w1, b1, w2, b2, w3, b3 = params
    h = jnp.maximum(x @ w1 + b1, 0.0)
    h = jnp.maximum(h @ w2 + b2, 0.0)
    return h @ w3 + b3


if __name__ == "__main__":
    key = jax.random.PRNGKey(0)
    kx, kx2, kx3, kp = jax.random.split(key, 4)

    input_size = 16
    params = init_params(kp, input_size)

    # Small test at the module's natural shapes (single full-extent block).
    batch = 8
    x = jax.random.normal(kx, (batch, input_size), jnp.float32)
    out = jax.block_until_ready(simple_nn_forward(x, *params))
    assert out.shape == (batch, OUT)
    assert jnp.allclose(out, _reference(x, params), atol=1e-5, rtol=1e-5)

    # Multi-step grid with a partial (masked) last block: 40 rows, tile 16 -> 3 steps.
    batch2 = 40
    x2 = jax.random.normal(kx2, (batch2, input_size), jnp.float32)
    out2 = jax.block_until_ready(simple_nn_forward(x2, *params, block_batch=16))
    assert out2.shape == (batch2, OUT)
    assert jnp.allclose(out2, _reference(x2, params), atol=1e-5, rtol=1e-5)

    # Batch not a multiple of 8: exercises masked partial-block reads/writes, no padding.
    batch3 = 37
    x3 = jax.random.normal(kx3, (batch3, input_size), jnp.float32)
    out3 = jax.block_until_ready(simple_nn_forward(x3, *params))
    assert out3.shape == (batch3, OUT)
    assert jnp.allclose(out3, _reference(x3, params), atol=1e-5, rtol=1e-5)

    print("KERNEL_OK")
</pallas_src>

<mosaic_0001>
module attributes {stable_mosaic.version = 11 : i64} {
  func.func @_mlp_kernel(%arg0: i32, %arg1: memref<8x16xf32, #tpu.memory_space<vmem>>, %arg2: memref<16x32xf32, #tpu.memory_space<vmem>>, %arg3: memref<1x32xf32, #tpu.memory_space<vmem>>, %arg4: memref<32x16xf32, #tpu.memory_space<vmem>>, %arg5: memref<1x16xf32, #tpu.memory_space<vmem>>, %arg6: memref<16x2xf32, #tpu.memory_space<vmem>>, %arg7: memref<1x2xf32, #tpu.memory_space<vmem>>, %arg8: memref<8x2xf32, #tpu.memory_space<vmem>>) attributes {dimension_semantics = [#tpu.dimension_semantics<parallel>], iteration_bounds = array<i64: 1>, scalar_prefetch = 0 : i64, scratch_operands = 0 : i64, tpu.core_type = #tpu.core_type<tc>, window_params = [{transform_indices = @transform_0, window_bounds = array<i64: 8, 16>}, {pipeline_mode = #tpu.pipeline_mode<synchronous>, transform_indices = @transform_1, window_bounds = array<i64: 16, 32>}, {pipeline_mode = #tpu.pipeline_mode<synchronous>, transform_indices = @transform_2, window_bounds = array<i64: 1, 32>}, {pipeline_mode = #tpu.pipeline_mode<synchronous>, transform_indices = @transform_3, window_bounds = array<i64: 32, 16>}, {pipeline_mode = #tpu.pipeline_mode<synchronous>, transform_indices = @transform_4, window_bounds = array<i64: 1, 16>}, {pipeline_mode = #tpu.pipeline_mode<synchronous>, transform_indices = @transform_5, window_bounds = array<i64: 16, 2>}, {pipeline_mode = #tpu.pipeline_mode<synchronous>, transform_indices = @transform_6, window_bounds = array<i64: 1, 2>}, {transform_indices = @transform_7, window_bounds = array<i64: 8, 2>}]} {
    %c0 = arith.constant 0 : index
    %c0_0 = arith.constant 0 : index
    %0 = vector.load %arg1[%c0, %c0_0] : memref<8x16xf32, #tpu.memory_space<vmem>>, vector<8x16xf32>
    %c0_1 = arith.constant 0 : index
    %c0_2 = arith.constant 0 : index
    %1 = vector.load %arg2[%c0_1, %c0_2] : memref<16x32xf32, #tpu.memory_space<vmem>>, vector<16x32xf32>
    %cst = arith.constant dense<0.000000e+00> : vector<8x32xf32>
    %2 = tpu.matmul %0, %1, %cst {dimension_numbers = #tpu.dot_dimension_numbers<[1], [0], [0], [1], [0, 0, 1, 1], [], []>} : vector<8x16xf32>, vector<16x32xf32>, vector<8x32xf32> -> vector<8x32xf32>
    %c0_3 = arith.constant 0 : index
    %c0_4 = arith.constant 0 : index
    %3 = vector.load %arg3[%c0_3, %c0_4] : memref<1x32xf32, #tpu.memory_space<vmem>>, vector<1x32xf32>
    %4 = vector.broadcast %3 : vector<1x32xf32> to vector<8x32xf32>
    %5 = arith.addf %2, %4 : vector<8x32xf32>
    %cst_5 = arith.constant 0.000000e+00 : f32
    %6 = vector.broadcast %cst_5 : f32 to vector<8x32xf32>
    %7 = arith.maximumf %5, %6 : vector<8x32xf32>
    %c0_6 = arith.constant 0 : index
    %c0_7 = arith.constant 0 : index
    %8 = vector.load %arg4[%c0_6, %c0_7] : memref<32x16xf32, #tpu.memory_space<vmem>>, vector<32x16xf32>
    %cst_8 = arith.constant dense<0.000000e+00> : vector<8x16xf32>
    %9 = tpu.matmul %7, %8, %cst_8 {dimension_numbers = #tpu.dot_dimension_numbers<[1], [0], [0], [1], [0, 0, 1, 1], [], []>} : vector<8x32xf32>, vector<32x16xf32>, vector<8x16xf32> -> vector<8x16xf32>
    %c0_9 = arith.constant 0 : index
    %c0_10 = arith.constant 0 : index
    %10 = vector.load %arg5[%c0_9, %c0_10] : memref<1x16xf32, #tpu.memory_space<vmem>>, vector<1x16xf32>
    %11 = vector.broadcast %10 : vector<1x16xf32> to vector<8x16xf32>
    %12 = arith.addf %9, %11 : vector<8x16xf32>
    %cst_11 = arith.constant 0.000000e+00 : f32
    %13 = vector.broadcast %cst_11 : f32 to vector<8x16xf32>
    %14 = arith.maximumf %12, %13 : vector<8x16xf32>
    %c0_12 = arith.constant 0 : index
    %c0_13 = arith.constant 0 : index
    %15 = vector.load %arg6[%c0_12, %c0_13] : memref<16x2xf32, #tpu.memory_space<vmem>>, vector<16x2xf32>
    %cst_14 = arith.constant dense<0.000000e+00> : vector<8x2xf32>
    %16 = tpu.matmul %14, %15, %cst_14 {dimension_numbers = #tpu.dot_dimension_numbers<[1], [0], [0], [1], [0, 0, 1, 1], [], []>} : vector<8x16xf32>, vector<16x2xf32>, vector<8x2xf32> -> vector<8x2xf32>
    %c0_15 = arith.constant 0 : index
    %c0_16 = arith.constant 0 : index
    %17 = vector.load %arg7[%c0_15, %c0_16] : memref<1x2xf32, #tpu.memory_space<vmem>>, vector<1x2xf32>
    %18 = vector.broadcast %17 : vector<1x2xf32> to vector<8x2xf32>
    %19 = arith.addf %16, %18 : vector<8x2xf32>
    %c0_17 = arith.constant 0 : index
    %c0_18 = arith.constant 0 : index
    %20 = vector.load %arg8[%c0_17, %c0_18] : memref<8x2xf32, #tpu.memory_space<vmem>>, vector<8x2xf32>
    tpu.vector_store %arg8[%c0_17, %c0_18], %19 {strides = array<i32>} : memref<8x2xf32, #tpu.memory_space<vmem>>, vector<8x2xf32>,
    return
  }
  func.func @transform_0(%arg0: i32) -> (i32, i32) {
    %c0_i32 = arith.constant 0 : i32
    %c0_i32_0 = arith.constant 0 : i32
    return %arg0, %c0_i32 : i32, i32
  }
  func.func @transform_1(%arg0: i32) -> (i32, i32) {
    %c0_i32 = arith.constant 0 : i32
    %c0_i32_0 = arith.constant 0 : i32
    %c0_i32_1 = arith.constant 0 : i32
    return %c0_i32, %c0_i32_0 : i32, i32
  }
  func.func @transform_2(%arg0: i32) -> (i32, i32) {
    %c0_i32 = arith.constant 0 : i32
    %c0_i32_0 = arith.constant 0 : i32
    %c0_i32_1 = arith.constant 0 : i32
    return %c0_i32, %c0_i32_0 : i32, i32
  }
  func.func @transform_3(%arg0: i32) -> (i32, i32) {
    %c0_i32 = arith.constant 0 : i32
    %c0_i32_0 = arith.constant 0 : i32
    %c0_i32_1 = arith.constant 0 : i32
    return %c0_i32, %c0_i32_0 : i32, i32
  }
  func.func @transform_4(%arg0: i32) -> (i32, i32) {
    %c0_i32 = arith.constant 0 : i32
    %c0_i32_0 = arith.constant 0 : i32
    %c0_i32_1 = arith.constant 0 : i32
    return %c0_i32, %c0_i32_0 : i32, i32
  }
  func.func @transform_5(%arg0: i32) -> (i32, i32) {
    %c0_i32 = arith.constant 0 : i32
    %c0_i32_0 = arith.constant 0 : i32
    %c0_i32_1 = arith.constant 0 : i32
    return %c0_i32, %c0_i32_0 : i32, i32
  }
  func.func @transform_6(%arg0: i32) -> (i32, i32) {
    %c0_i32 = arith.constant 0 : i32
    %c0_i32_0 = arith.constant 0 : i32
    %c0_i32_1 = arith.constant 0 : i32
    return %c0_i32, %c0_i32_0 : i32, i32
  }
  func.func @transform_7(%arg0: i32) -> (i32, i32) {
    %c0_i32 = arith.constant 0 : i32
    %c0_i32_0 = arith.constant 0 : i32
    return %arg0, %c0_i32 : i32, i32
  }
}

</mosaic_0001>

<bundles_post_ra>
// kernel: tpu_custom_call.1
= control target key start
LH: loop header
LB: loop body
LE: loop exit
PB: predicated region body
PF: predicated region fallthrough
CT: control target
= control target key end

     0   :  { %v329_v0 = vmov 0.0   ;;  %vm330_vm0 = vmmov 0   ;;  %vm36_vm1 = vcmask 130048   ;;  %vm122_vm2 = vcmask 261120   ;;  %s412_s1 = inlined_call_operand.vmem [shape: f32[16,32], index: 1, kind: input, shape index: {}]   ;;  %s413_s0 = inlined_call_operand.vmem [shape: f32[8,16], index: 0, kind: input, shape index: {}]   ;;  %s414_s3 = inlined_call_operand.vmem [shape: f32[32,16], index: 3, kind: input, shape index: {}]   ;;  %s415_s2 = inlined_call_operand.vmem [shape: f32[1,32], index: 2, kind: input, shape index: {}]   ;;  %s416_s5 = inlined_call_operand.vmem [shape: f32[16,2], index: 5, kind: input, shape index: {}]   ;;  %s417_s4 = inlined_call_operand.vmem [shape: f32[1,16], index: 4, kind: input, shape index: {}]   ;;  %s418_s6 = inlined_call_operand.vmem [shape: f32[1,2], index: 6, kind: input, shape index: {}]   ;;  %s419_s7 = inlined_call_operand.vmem [shape: f32[8,2], index: 7, kind: output, shape index: {}]  }
   0x1   :  { %302 = vmatprep.subr.mxu0 %v329_v0  ;;  %v28_v1 = vld [vmem:[%s412_s1 + $0x8] sm:$0xff]  ;;  %v27_v2 = vld [vmem:[%s412_s1] sm:$0xff]  ;;  %306 = vmatprep.mubr.msk.f32.mxu0 %vm330_vm0, %v329_v0  ;;  %v114_v4 = vld [vmem:[%s414_s3 + $0x18] sm:$0xff]  ;;  %vm279_vm3 = vcmask 15360  }
   0x2   :  { %303 = vmatpush3.msra.mxu0 %v28_v1  ;;  %v26_v3 = vld [vmem:[%s413_s0] sm:$0xff]  ;;  %309 = vmatprep.subr.mxu1 %v329_v0  ;;  %v113_v5 = vld [vmem:[%s414_s3 + $0x10] sm:$0xff]  ;;  %v112_v6 = vld [vmem:[%s414_s3 + $0x8] sm:$0xff] }
   0x3   :  { %304 = vmatprep.subr.mxu0 %v329_v0  ;;  %310 = vmatpush3.msra.mxu1 %v114_v4  ;;  %v111_v7 = vld [vmem:[%s414_s3] sm:$0xff]  ;;  %v198_v13 = vld [vmem:[%s416_s5 + $0x8] sm:$0xff] }
   0x4   :  { %305 = vmatpush3.msra.mxu0 %v27_v2  ;;  %311 = vmatprep.subr.mxu1 %v329_v0  ;;  %v285_v8 = vld [vmem:[%s415_s2] ss:$0 sm:$0xff] }
   0x5   :  { %307 = vmatmul.mubr.msk.f32.vlgmr.msra.gmra.mxu0 %vm36_vm1, %v26_v3  ;;  %317 = vmatprep.mubr.msk.f32.mxu1 %vm330_vm0, %v329_v0  ;;  %v197_v14 = vld [vmem:[%s416_s5] sm:$0xff] }
   0x6   :  { %320 = vmatprep.subr.mxu0 %v329_v0  ;;  %324 = vmatprep.mubr.msk.f32.mxu0 %vm330_vm0, %v329_v0  ;;  %v287_v15 = vld [vmem:[%s417_s4] ss:$0 sm:$0xff] }
   0x7   :  { %312 = vmatpush3.msra.mxu1 %v113_v5  ;;  %321 = vmatpush3.msra.mxu0 %v198_v13  ;;  %v289_v20 = vld [vmem:[%s418_s6] ss:$0 sm:$0xff] }
   0x8   :  { %313 = vmatprep.subr.mxu1 %v329_v0  ;;  %322 = vmatprep.subr.mxu0 %v329_v0 }
   0x9   :  { %314 = vmatpush3.msra.mxu1 %v112_v6  ;;  %323 = vmatpush3.msra.mxu0 %v197_v14 }
   0xa   :  { %315 = vmatprep.subr.mxu1 %v329_v0 }
   0xb   :  { %316 = vmatpush3.msra.mxu1 %v111_v7 }
  0xc5   :  { %v106_v9 = vpop.f32.mrf.mxu0 }
  0xc6   :  { %v107_v10 = vadd.f32 %v285_v8, %v106_v9 }
  0xc7   :  { %v308_v11 = vpop.f32.mrf.mxu0 }
  0xc8   :  { %v110_v12 = vmax.f32 %v107_v10, 0.0 }
  0xca   :  { %318 = vmatmul.mubr.msk.f32.vlgmr.msra.gmra.mxu1 %vm122_vm2, %v110_v12 }
 0x18a   :  { %v192_v16 = vpop.f32.mrf.mxu1 }
 0x18b   :  { %v193_v17 = vadd.f32 %v287_v15, %v192_v16 }
 0x18c   :  { %v319_v18 = vpop.f32.mrf.mxu1 }
 0x18d   :  { %v196_v19 = vmax.f32 %v193_v17, 0.0 }
 0x18f   :  { %325 = vmatmul.mubr.msk.f32.vlgmr.msra.gmra.mxu0 %vm36_vm1, %v196_v19 }
 0x24f   :  { %v275_v21 = vpop.f32.mrf.mxu0 }
 0x250   :  { %v276_v22 = vadd.f32 %v289_v20, %v275_v21 }
 0x251   :  { %v326_v23 = vpop.f32.mrf.mxu0 }
 0x252   :  { %280 = vst.msk [vmem:[%s419_s7] sm:$0xff] %vm279_vm3, %v276_v22 }

</bundles_post_ra>
